<compile_context>
chip_gen: v7x
topology: tpu7x:2x2x1
jax: 0.10.0
libtpu: 0.0.40
codegen_flags: <defaults>
</compile_context>

<pallas_src>
import functools

import jax
import jax.numpy as jnp
from jax.experimental import pallas as pl
from jax.experimental.pallas import tpu as pltpu


def _kln01_kernel(x_ref, o_ref, sum_ref, sumsq_ref, *,
                  direction, minimize, n_rows, tile_rows, needs_mask):
    i = pl.program_id(0)

    @pl.when(i == 0)
    def _init():
        sum_ref[...] = jnp.zeros_like(sum_ref)
        sumsq_ref[...] = jnp.zeros_like(sumsq_ref)

    # Native-dtype DMA; cast to f32 for accumulation only once in VMEM.
    x = x_ref[...].astype(jnp.float32)                      # (tile_rows, D)
    if needs_mask:
        # Only generated when N % tile_rows != 0: zero out out-of-bounds rows
        # of the last (partial) block.  jnp.where so garbage (even NaN) in the
        # padded region cannot leak into the sums.
        row = i * tile_rows + jax.lax.broadcasted_iota(jnp.int32, x.shape, 0)
        x = jnp.where(row < n_rows, x, 0.0)

    sum_ref[...] += jnp.sum(x, axis=0, keepdims=True)        # (1, D)
    sumsq_ref[...] += jnp.sum(x * x, axis=0, keepdims=True)  # (1, D)

    @pl.when(i == pl.num_programs(0) - 1)
    def _finalize():
        inv_n = jnp.float32(1.0 / n_rows)
        mean = sum_ref[...] * inv_n
        ex2 = sumsq_ref[...] * inv_n
        # population (biased) variance, matching AGE/PIONEER utils.var
        var = ex2 - mean * mean
        if direction == "pq":
            # (1 + mean^2) / (2 * var^2)  — reciprocal + mul (EUP-friendly)
            t1 = (1.0 + mean * mean) * 0.5 * pl.reciprocal(var * var, approx=False)
            t2 = jnp.log(var)
        else:  # 'qp'
            t1 = (var + mean * mean) * 0.5
            t2 = -0.5 * jnp.log(var)
        kl = jnp.mean(t1 + t2 - 0.5)                          # scalar over D
        if not minimize:
            kl = -kl
        o_ref[...] = jnp.full((1, 1), kl, dtype=o_ref.dtype)


def _pick_tile_rows(n_rows, d, itemsize):
    """Rows per block: multiple of 8 sublanes, ~2 MiB per block.

    2 MiB double-buffered (~4 MiB) stays well under v5e's 16 MiB default
    scoped VMEM and v7x's 32 MiB default, while being large enough (>=512
    rows for typical D) to approach the HBM roofline.
    """
    target_bytes = 2 * 1024 * 1024
    rows = target_bytes // max(1, d * itemsize)
    rows = (rows // 8) * 8
    rows = max(8, min(rows, 2048))
    if rows >= n_rows:
        return n_rows  # single full-array block (full dims always legal)
    return rows


def kln01_loss(samples, direction="pq", minimize=True, tile_rows=None):
    """Pallas-TPU implementation of KLN01Loss.forward."""
    assert direction in ("pq", "qp"), "direction?"
    assert samples.ndim == 2, "?"
    n, d = samples.shape
    if tile_rows is None:
        tile_rows = _pick_tile_rows(n, d, samples.dtype.itemsize)
    tile_rows = min(tile_rows, n)
    num_tiles = pl.cdiv(n, tile_rows)
    needs_mask = (n % tile_rows) != 0

    kernel = functools.partial(
        _kln01_kernel,
        direction=direction, minimize=minimize,
        n_rows=n, tile_rows=tile_rows, needs_mask=needs_mask)

    out = pl.pallas_call(
        kernel,
        out_shape=jax.ShapeDtypeStruct((1, 1), jnp.float32),
        grid_spec=pltpu.PrefetchScalarGridSpec(
            num_scalar_prefetch=0,
            grid=(num_tiles,),
            in_specs=[pl.BlockSpec((tile_rows, d), lambda i: (i, 0))],
            out_specs=pl.BlockSpec((1, 1), lambda i: (0, 0)),
            scratch_shapes=[pltpu.VMEM((1, d), jnp.float32),   # sum(x)
                            pltpu.VMEM((1, d), jnp.float32)],  # sum(x*x)
        ),
        compiler_params=pltpu.CompilerParams(
            dimension_semantics=("arbitrary",)),  # reduction axis
    )(samples)  # NOTE: no wrapper-side cast; native-dtype DMA (bf16 stays bf16)
    return out[0, 0]


def _reference(samples, direction="pq", minimize=True):
    x = samples.astype(jnp.float32)
    mean = jnp.mean(x, axis=0)
    var = jnp.mean((x - mean[None, :]) ** 2, axis=0)
    if direction == "pq":
        kl = jnp.mean((1.0 + mean**2) / (2.0 * var**2) + jnp.log(var) - 0.5)
    else:
        kl = jnp.mean((var + mean**2) / 2.0 - 0.5 * jnp.log(var) - 0.5)
    return kl if minimize else -kl


if __name__ == "__main__":
    key = jax.random.PRNGKey(0)
    k1, k2, k3 = jax.random.split(key, 3)
    ok = True

    # Small shape consistent with the module: N=8 latent samples, D=32 dims.
    x_small = jax.random.normal(k1, (8, 32), dtype=jnp.float32)
    for direction in ("pq", "qp"):
        for minimize in (True, False):
            got = jax.block_until_ready(kln01_loss(x_small, direction, minimize))
            want = _reference(x_small, direction, minimize)
            ok &= bool(jnp.allclose(got, want, rtol=1e-4, atol=1e-4))

    # Multi-tile path (grid over N) with a partial last tile (36 % 8 != 0).
    x_tiled = jax.random.normal(k2, (36, 32), dtype=jnp.float32) * 0.7 + 0.1
    got = jax.block_until_ready(kln01_loss(x_tiled, "pq", True, tile_rows=8))
    want = _reference(x_tiled, "pq", True)
    ok &= bool(jnp.allclose(got, want, rtol=1e-4, atol=1e-4))

    # Native-dtype (bf16) DMA with in-kernel f32 accumulation, multi-tile.
    x_bf16 = (jax.random.normal(k3, (48, 32), dtype=jnp.float32) * 0.8
              ).astype(jnp.bfloat16)
    got = jax.block_until_ready(kln01_loss(x_bf16, "qp", False, tile_rows=16))
    want = _reference(x_bf16, "qp", False)
    ok &= bool(jnp.allclose(got, want, rtol=5e-3, atol=5e-3))

    if ok:
        print("KERNEL_OK")
</pallas_src>

<mosaic_0001>
module attributes {stable_mosaic.version = 11 : i64} {
  func.func @_kln01_kernel(%arg0: i32, %arg1: memref<8x32xf32, #tpu.memory_space<vmem>>, %arg2: memref<1x1xf32, #tpu.memory_space<vmem>>, %arg3: memref<1x32xf32, #tpu.memory_space<vmem>>, %arg4: memref<1x32xf32, #tpu.memory_space<vmem>>) attributes {dimension_semantics = [#tpu.dimension_semantics<arbitrary>], iteration_bounds = array<i64: 1>, scalar_prefetch = 0 : i64, scratch_operands = 2 : i64, tpu.core_type = #tpu.core_type<tc>, window_params = [{transform_indices = @transform_0, window_bounds = array<i64: 8, 32>}, {pipeline_mode = #tpu.pipeline_mode<synchronous>, transform_indices = @transform_1, window_bounds = array<i64: 1, 1>}]} {
    %c0_i32 = arith.constant 0 : i32
    %0 = arith.cmpi eq, %arg0, %c0_i32 : i32
    %1 = arith.extui %0 : i1 to i32
    %c0_i32_0 = arith.constant 0 : i32
    %2 = arith.cmpi ne, %1, %c0_i32_0 : i32
    scf.if %2 {
      %cst_13 = arith.constant 0.000000e+00 : f32
      %18 = vector.broadcast %cst_13 : f32 to vector<1x32xf32>
      %c0_14 = arith.constant 0 : index
      %c0_15 = arith.constant 0 : index
      %19 = vector.load %arg3[%c0_14, %c0_15] : memref<1x32xf32, #tpu.memory_space<vmem>>, vector<1x32xf32>
      tpu.vector_store %arg3[%c0_14, %c0_15], %18 {strides = array<i32>} : memref<1x32xf32, #tpu.memory_space<vmem>>, vector<1x32xf32>,
      %cst_16 = arith.constant 0.000000e+00 : f32
      %20 = vector.broadcast %cst_16 : f32 to vector<1x32xf32>
      %c0_17 = arith.constant 0 : index
      %c0_18 = arith.constant 0 : index
      %21 = vector.load %arg4[%c0_17, %c0_18] : memref<1x32xf32, #tpu.memory_space<vmem>>, vector<1x32xf32>
      tpu.vector_store %arg4[%c0_17, %c0_18], %20 {strides = array<i32>} : memref<1x32xf32, #tpu.memory_space<vmem>>, vector<1x32xf32>,
    } else {
    }
    %c0 = arith.constant 0 : index
    %c0_1 = arith.constant 0 : index
    %3 = vector.load %arg1[%c0, %c0_1] : memref<8x32xf32, #tpu.memory_space<vmem>>, vector<8x32xf32>
    %c0_2 = arith.constant 0 : index
    %c0_3 = arith.constant 0 : index
    %4 = vector.load %arg3[%c0_2, %c0_3] : memref<1x32xf32, #tpu.memory_space<vmem>>, vector<1x32xf32>
    %cst = arith.constant dense<0.000000e+00> : vector<32xf32>
    %5 = vector.multi_reduction <add>, %3, %cst [0] : vector<8x32xf32> to vector<32xf32>
    %6 = vector.shape_cast %5 : vector<32xf32> to vector<1x32xf32>
    %7 = arith.addf %4, %6 : vector<1x32xf32>
    %c0_4 = arith.constant 0 : index
    %c0_5 = arith.constant 0 : index
    %8 = vector.load %arg3[%c0_4, %c0_5] : memref<1x32xf32, #tpu.memory_space<vmem>>, vector<1x32xf32>
    tpu.vector_store %arg3[%c0_4, %c0_5], %7 {strides = array<i32>} : memref<1x32xf32, #tpu.memory_space<vmem>>, vector<1x32xf32>,
    %c0_6 = arith.constant 0 : index
    %c0_7 = arith.constant 0 : index
    %9 = vector.load %arg4[%c0_6, %c0_7] : memref<1x32xf32, #tpu.memory_space<vmem>>, vector<1x32xf32>
    %10 = arith.mulf %3, %3 : vector<8x32xf32>
    %cst_8 = arith.constant dense<0.000000e+00> : vector<32xf32>
    %11 = vector.multi_reduction <add>, %10, %cst_8 [0] : vector<8x32xf32> to vector<32xf32>
    %12 = vector.shape_cast %11 : vector<32xf32> to vector<1x32xf32>
    %13 = arith.addf %9, %12 : vector<1x32xf32>
    %c0_9 = arith.constant 0 : index
    %c0_10 = arith.constant 0 : index
    %14 = vector.load %arg4[%c0_9, %c0_10] : memref<1x32xf32, #tpu.memory_space<vmem>>, vector<1x32xf32>
    tpu.vector_store %arg4[%c0_9, %c0_10], %13 {strides = array<i32>} : memref<1x32xf32, #tpu.memory_space<vmem>>, vector<1x32xf32>,
    %c0_i32_11 = arith.constant 0 : i32
    %15 = arith.cmpi eq, %arg0, %c0_i32_11 : i32
    %16 = arith.extui %15 : i1 to i32
    %c0_i32_12 = arith.constant 0 : i32
    %17 = arith.cmpi ne, %16, %c0_i32_12 : i32
    scf.if %17 {
      %c0_13 = arith.constant 0 : index
      %c0_14 = arith.constant 0 : index
      %18 = vector.load %arg3[%c0_13, %c0_14] : memref<1x32xf32, #tpu.memory_space<vmem>>, vector<1x32xf32>
      %cst_15 = arith.constant 1.250000e-01 : f32
      %19 = vector.broadcast %cst_15 : f32 to vector<1x32xf32>
      %20 = arith.mulf %18, %19 : vector<1x32xf32>
      %c0_16 = arith.constant 0 : index
      %c0_17 = arith.constant 0 : index
      %21 = vector.load %arg4[%c0_16, %c0_17] : memref<1x32xf32, #tpu.memory_space<vmem>>, vector<1x32xf32>
      %cst_18 = arith.constant 1.250000e-01 : f32
      %22 = vector.broadcast %cst_18 : f32 to vector<1x32xf32>
      %23 = arith.mulf %21, %22 : vector<1x32xf32>
      %24 = arith.mulf %20, %20 : vector<1x32xf32>
      %25 = arith.subf %23, %24 : vector<1x32xf32>
      %26 = arith.mulf %20, %20 : vector<1x32xf32>
      %cst_19 = arith.constant 1.000000e+00 : f32
      %27 = vector.broadcast %cst_19 : f32 to vector<1x32xf32>
      %28 = arith.addf %27, %26 : vector<1x32xf32>
      %cst_20 = arith.constant 5.000000e-01 : f32
      %29 = vector.broadcast %cst_20 : f32 to vector<1x32xf32>
      %30 = arith.mulf %28, %29 : vector<1x32xf32>
      %31 = arith.mulf %25, %25 : vector<1x32xf32>
      %32 = tpu.reciprocal %31 : vector<1x32xf32> -> vector<1x32xf32>
      %33 = arith.mulf %30, %32 : vector<1x32xf32>
      %34 = math.log %25 : vector<1x32xf32>
      %35 = arith.addf %33, %34 : vector<1x32xf32>
      %cst_21 = arith.constant 5.000000e-01 : f32
      %36 = vector.broadcast %cst_21 : f32 to vector<1x32xf32>
      %37 = arith.subf %35, %36 : vector<1x32xf32>
      %38 = vector.shape_cast %37 : vector<1x32xf32> to vector<1x1x32xf32>
      %cst_22 = arith.constant dense<0.000000e+00> : vector<1xf32>
      %39 = vector.multi_reduction <add>, %38, %cst_22 [1, 2] : vector<1x1x32xf32> to vector<1xf32>
      %40 = vector.shape_cast %39 : vector<1xf32> to vector<1x1x1xf32>
      %41 = vector.extract %40[0, 0, 0] : f32 from vector<1x1x1xf32>
      %cst_23 = arith.constant 3.200000e+01 : f32
      %42 = arith.divf %41, %cst_23 : f32
      %43 = vector.broadcast %42 : f32 to vector<1x1xf32>
      %c0_24 = arith.constant 0 : index
      %c0_25 = arith.constant 0 : index
      %44 = vector.load %arg2[%c0_24, %c0_25] : memref<1x1xf32, #tpu.memory_space<vmem>>, vector<1x1xf32>
      tpu.vector_store %arg2[%c0_24, %c0_25], %43 {strides = array<i32>} : memref<1x1xf32, #tpu.memory_space<vmem>>, vector<1x1xf32>,
    } else {
    }
    return
  }
  func.func @transform_0(%arg0: i32) -> (i32, i32) {
    %c0_i32 = arith.constant 0 : i32
    %c0_i32_0 = arith.constant 0 : i32
    return %arg0, %c0_i32 : i32, i32
  }
  func.func @transform_1(%arg0: i32) -> (i32, i32) {
    %c0_i32 = arith.constant 0 : i32
    %c0_i32_0 = arith.constant 0 : i32
    %c0_i32_1 = arith.constant 0 : i32
    return %c0_i32, %c0_i32_0 : i32, i32
  }
}

</mosaic_0001>

<bundles_post_ra>
// kernel: tpu_custom_call.1
= control target key start
LH: loop header
LB: loop body
LE: loop exit
PB: predicated region body
PF: predicated region fallthrough
CT: control target
= control target key end

     0   :  { %6 = vsyncpa [#allocation5], 0  ;;  %s201_s0 = inlined_call_operand.hbm [shape: f32[8,32], index: 0, kind: input, shape index: {}]   ;;  %s202_s1 = inlined_call_operand.hbm [shape: f32[1,1], index: 1, kind: output, shape index: {}]  }
   0x1   :  { %7 = vsyncpa [#allocation6], 0  ;;  %s159_s6 = smov [#allocation4]   ;;  %s111_s10 = scalar_lea.hbm %s201_s0, 128 }
   0x2   :  { %s14_s7 = sshll.u32 %s159_s6, 4  ;;  %p112_p0 = scmp.ne.s32.totalorder %s201_s0, %s111_s10  ;;  %s15_s7 = int_to_ptr.vmem [resolvable:$true] %s14_s7 }
   0x3   :  { %p115_p1 = scmp.lt.u32.totalorder %s111_s10, %s201_s0 }
   0x5   :  { %p117_p2 = pnand %p115_p1, %p112_p0 }
   0x7   :  { %120 = shalt.err (!%p117_p2)
}
   0x8   :  { %s121_s15 = scalar_lea.vmem %s15_s7, 128  ;;  %p126_p4 = scmp.lt.s32.totalorder %s15_s7, %s15_s7 }
   0x9   :  { %p122_p3 = scmp.ne.s32.totalorder %s15_s7, %s121_s15  ;;  %p127_p5 = scmp.lt.s32.totalorder %s121_s15, %s121_s15 }
   0xb   :  { %p128_p6 = por %p127_p5, %p126_p4 }
   0xd   :  { %p129_p7 = pnand %p128_p6, %p122_p3 }
   0xf   :  { %132 = shalt.err (!%p129_p7)
}
  0x10   :  { %17 = dma.hbm_to_vmem [thread:$0]  %s201_s0, 128, %s15_s7, [#allocation5]  }
  0x11   :  { %155 = dma.done.wait [#allocation5], 128  }
  0x12   :  { %156 = vsyncadd [#allocation5], 4294967168  ;;  %vm25_vm0 = vcmask 253952   ;;  %v160_v0 = vmov 0.0   ;;  %vm30_vm1 = vcmask 261120   ;;  %v28_v1 = vld [vmem:[#allocation4] sm:$0xff] }
  0x13   :  { %26 = vst.msk [vmem:[#allocation2] sm:$0x1] %vm25_vm0, %v160_v0  ;;  %27 = vst.msk [vmem:[#allocation3] sm:$0x1] %vm25_vm0, %v160_v0  ;;  %v31_v2 = vsel %vm30_vm1, %v28_v1, 0.0  ;;  %v42_v3 = vmul.f32 %v28_v1, %v28_v1  ;;  %s161_s0 = smov [#allocation7]  }
  0x14   :  { %v32_v4 = vrot.slane %v31_v2, 4  ;;  %s92_s18 = sshll.u32 %s161_s0, 4  ;;  %vm84_vm2 = vcmask 0   ;;  %s93_s18 = int_to_ptr.vmem [resolvable:$true] %s92_s18 }
  0x15   :  { %v43_v5 = vsel %vm30_vm1, %v42_v3, 0.0  ;;  %s133_s21 = scalar_lea.vmem %s93_s18, 16  ;;  %s137_s22 = scalar_lea.vmem %s93_s18, 32 }
  0x16   :  { %v33_v6 = vadd.f32 %v32_v4, %v31_v2  ;;  %v44_v7 = vrot.slane %v43_v5, 4  ;;  %p134_p8 = scmp.ne.s32.totalorder %s93_s18, %s133_s21  ;;  %p138_p9 = scmp.lt.s32.totalorder %s93_s18, %s93_s18 }
  0x17   :  { %p139_p10 = scmp.lt.s32.totalorder %s137_s22, %s133_s21 }
  0x18   :  { %v34_v8 = vrot.slane %v33_v6, 2  ;;  %v45_v9 = vadd.f32 %v44_v7, %v43_v5 }
  0x19   :  { %p140_p11 = por %p139_p10, %p138_p9 }
  0x1a   :  { %v35_v10 = vadd.f32 %v34_v8, %v33_v6  ;;  %v46_v11 = vrot.slane %v45_v9, 2  ;;  %v29_v14 = vld [vmem:[#allocation2] sm:$0x1]  ;;  %v41_v17 = vld [vmem:[#allocation3] sm:$0x1] }
  0x1b   :  { %p141_p12 = pnand %p140_p11, %p134_p8 }
  0x1c   :  { %v36_v12 = vrot.slane %v35_v10, 1  ;;  %v47_v13 = vadd.f32 %v46_v11, %v45_v9 }
  0x1e   :  { %v37_v15 = vadd.f32 %v36_v12, %v35_v10  ;;  %v48_v16 = vrot.slane %v47_v13, 1 }
  0x20   :  { %v38_v18 = vadd.f32 %v37_v15, %v29_v14  ;;  %v49_v19 = vadd.f32 %v48_v16, %v47_v13 }
  0x22   :  { %40 = vst.msk [vmem:[#allocation2] sm:$0x1] %vm25_vm0, %v38_v18  ;;  %v50_v20 = vadd.f32 %v49_v19, %v41_v17 }
  0x24   :  { %51 = vst.msk [vmem:[#allocation3] sm:$0x1] %vm25_vm0, %v50_v20 }
  0x29   :  { %v55_v21 = vld [vmem:[#allocation2] sm:$0x1] }
  0x2a   :  { %v56_v22 = vmul.f32 0.125, %v55_v21 }
  0x2b   :  { %v57_v23 = vld [vmem:[#allocation3] sm:$0x1] }
  0x2c   :  { %v58_v24 = vmul.f32 0.125, %v57_v23  ;;  %v59_v25 = vmul.f32 %v56_v22, %v56_v22 }
  0x2e   :  { %v60_v26 = vsub.f32 %v58_v24, %v59_v25  ;;  %v61_v28 = vadd.f32 1.0, %v59_v25 }
  0x30   :  { %v63_v27 = vmul.f32 %v60_v26, %v60_v26  ;;  %107 = vlog2.f32 %v60_v26  ;;  %v62_v29 = vmul.f32 0.5, %v61_v28 }
  0x32   :  { %109 = vrcp.f32 %v63_v27 }
  0x3a   :  { %v108_v30 = vpop.eup %107 }
  0x3b   :  { %v67_v31 = vmul.f32 0.6931472, %v108_v30 }
  0x3c   :  { %v110_v32 = vpop.eup %109 }
  0x3d   :  { %v65_v33 = vmul.f32 %v110_v32, %v62_v29 }
  0x3f   :  { %v68_v34 = vadd.f32 %v67_v31, %v65_v33 }
  0x41   :  { %v101_v35 = vadd.f32 -0.5, %v68_v34 }
  0x43   :  { %v70_v36 = vsel %vm25_vm0, %v101_v35, 0.0 }
  0x44   :  { %71 = vadd.xlane.f32.xlu0 %v70_v36 }
  0xd1   :  { %v72_v37 = vpop.xlane.xlu0 %71 }
  0xd2   :  { %v73_v38 = vrot.slane %v72_v37, 4 }
  0xd4   :  { %v74_v39 = vadd.f32 %v73_v38, %v72_v37 }
  0xd6   :  { %v75_v40 = vrot.slane %v74_v39, 2 }
  0xd8   :  { %v76_v41 = vadd.f32 %v75_v40, %v74_v39 }
  0xda   :  { %v77_v42 = vrot.slane %v76_v41, 1 }
  0xdc   :  { %v78_v43 = vadd.f32 %v77_v42, %v76_v41 }
  0xde   :  { %102 = vpush %v78_v43 }
 0x10f   :  { %s103_s19 = spop %102 }
 0x110   :  { %s82_s20 = smul.f32 0.03125, %s103_s19 }
 0x112   :  { %v83_v44 = vstv %s82_s20 }
 0x113   :  { %85 = vst.msk [vmem:[#allocation7] sm:$0x1] %vm84_vm2, %v83_v44 }
 0x114   :  { %144 = shalt.err (!%p141_p12)
}
 0x115   :  { %s145_s25 = scalar_lea.hbm %s202_s1, 16 }
 0x116   :  { %p146_p13 = scmp.ne.s32.totalorder %s202_s1, %s145_s25  ;;  %p149_p0 = scmp.lt.u32.totalorder %s145_s25, %s202_s1 }
 0x118   :  { %p151_p1 = pnand %p149_p0, %p146_p13 }
 0x11a   :  { %154 = shalt.err (!%p151_p1)
}
 0x11b   :  { %95 = dma.vmem_to_hbm [thread:$0]  %s93_s18, 16, %s202_s1, [#allocation6]  }
 0x11c   :  { %157 = dma.done.wait [#allocation6], 16  }
 0x11d   :  { %158 = vsyncadd [#allocation6], 4294967280 }
 0x11e   :  { %99 = vsyncpa [#allocation5], 1 }
 0x11f   :  { %100 = vsyncpa [#allocation6], 1 }

</bundles_post_ra>
